<compile_context>
chip_gen: v6e
topology: v6e:2x2x1
jax: 0.10.0
libtpu: 0.0.40
codegen_flags: <defaults>
</compile_context>

<pallas_src>
import functools

import jax
import jax.numpy as jnp
from jax import lax
from jax.experimental import pallas as pl
from jax.experimental.pallas import tpu as pltpu

LANE = 128  # TPU vreg lane width


def _round_up(x, m):
    return (x + m - 1) // m * m


def _conv_stats_kernel(p_ref, w_ref, stats_ref):
    """Pass 1: conv tile (stays in VMEM/vregs) -> per-tile BN partial sums.

    p_ref:     (TM, Kp)       tap-packed im2col rows (Kp = 128 here)
    w_ref:     (Kp, Coutp)    fused conv weight
    stats_ref: (1, 2, Coutp)  [sum, sum_sq] of this tile's conv outputs
    """
    acc = jnp.dot(p_ref[...], w_ref[...], preferred_element_type=jnp.float32)
    s1 = jnp.sum(acc, axis=0, keepdims=True)        # (1, Coutp)
    s2 = jnp.sum(acc * acc, axis=0, keepdims=True)  # (1, Coutp)
    stats_ref[...] = jnp.concatenate([s1, s2], axis=0).reshape(1, 2, -1)


def _conv_bn_relu_kernel(p_ref, w_ref, a_ref, b_ref, o_ref, *, cout):
    """Pass 2: recompute conv tile, fuse y*a + b and ReLU, write UNPADDED out."""
    acc = jnp.dot(p_ref[...], w_ref[...], preferred_element_type=jnp.float32)
    y = jnp.maximum(acc * a_ref[...] + b_ref[...], 0.0)
    o_ref[...] = y[:, :cout].astype(o_ref.dtype)


def conv_br(x_nchw, weight_oihw, gamma, beta, *,
            stride=1, padding=0, dilation=1, eps=1e-5):
    """PyTorch-layout wrapper: x is NCHW, weight is OIHW, returns NCHW."""
    N, Cin, H, W = x_nchw.shape
    Cout, Cin_w, KH, KW = weight_oihw.shape
    assert Cin == Cin_w

    Ho = (H + 2 * padding - dilation * (KH - 1) - 1) // stride + 1
    Wo = (W + 2 * padding - dilation * (KW - 1) - 1) // stride + 1

    K = KH * KW * Cin                 # real contraction size (36 here)
    Kp = _round_up(K, LANE)           # padded ONCE to a lane-dense 128
    Coutp = _round_up(Cout, LANE)
    M = N * Ho * Wo                   # flat output-pixel count

    # Row-tile size: multiple of 256 (MXU M occupancy on v6e/v7x); keep >= 2
    # tiles at small M so the parallel grid axis can feed both v7x cores.
    if M < 256:
        tm = _round_up(M, 8)
    else:
        tm = 256 if M < 2048 else 512
    Mp = _round_up(M, tm)
    n_t = Mp // tm

    # ---- layout glue (outside the hot kernels): tap-packed im2col ----------
    x_nhwc = jnp.transpose(x_nchw, (0, 2, 3, 1)).astype(jnp.float32)
    x_pad = jnp.pad(
        x_nhwc, ((0, 0), (padding, padding), (padding, padding), (0, 0)))
    taps = []
    for i in range(KH):
        for j in range(KW):
            h0, w0 = i * dilation, j * dilation
            taps.append(
                x_pad[:, h0:h0 + (Ho - 1) * stride + 1:stride,
                      w0:w0 + (Wo - 1) * stride + 1:stride, :])
    patches = jnp.concatenate(taps, axis=-1).reshape(M, K)   # (M, KH*KW*Cin)
    patches = jnp.pad(patches, ((0, Mp - M), (0, Kp - K)))   # pad rows + K

    # Weight: OIHW -> (KH, KW, Cin, Cout) -> (K, Cout), same (i, j, ci) row
    # order as the tap concatenation above; pad K and Cout once.
    w2d = jnp.transpose(weight_oihw, (2, 3, 1, 0)).reshape(K, Cout)
    w2d = jnp.pad(w2d.astype(jnp.float32), ((0, Kp - K), (0, Coutp - Cout)))

    cparams = pltpu.CompilerParams(dimension_semantics=("parallel",))

    # ---- pass 1: per-tile BN partial sums (conv never touches HBM) ---------
    stats = pl.pallas_call(
        _conv_stats_kernel,
        out_shape=jax.ShapeDtypeStruct((n_t, 2, Coutp), jnp.float32),
        grid=(n_t,),
        in_specs=[
            pl.BlockSpec((tm, Kp), lambda i: (i, 0)),
            pl.BlockSpec((Kp, Coutp), lambda i: (0, 0)),
        ],
        out_specs=pl.BlockSpec((1, 2, Coutp), lambda i: (i, 0, 0)),
        compiler_params=cparams,
    )(patches, w2d)

    # ---- tiny per-channel BN finalize (plain-JAX glue) ----------------------
    total = jnp.sum(stats, axis=0)                 # (2, Coutp)
    cnt = jnp.float32(M)                           # true sample count
    mean = total[0] / cnt
    # NOTE: var = E[x^2] - mean^2 can lose precision when |mean| >> std; a
    # centered (Welford-style) reduction would need an extra pass.  Fine at
    # the 1e-4 tolerance used here.  Padded rows contribute exact zeros.
    var = jnp.maximum(total[1] / cnt - mean * mean, 0.0)
    inv = lax.rsqrt(var + eps)
    gamma_p = jnp.pad(gamma.astype(jnp.float32), (0, Coutp - Cout))
    beta_p = jnp.pad(beta.astype(jnp.float32), (0, Coutp - Cout))
    a = (gamma_p * inv).reshape(1, Coutp)
    b = (beta_p - mean * gamma_p * inv).reshape(1, Coutp)

    # ---- pass 2: recompute conv, fuse BN scale/shift + ReLU, unpadded out --
    kernel2 = functools.partial(_conv_bn_relu_kernel, cout=Cout)
    out_flat = pl.pallas_call(
        kernel2,
        out_shape=jax.ShapeDtypeStruct((Mp, Cout), x_nchw.dtype),
        grid=(n_t,),
        in_specs=[
            pl.BlockSpec((tm, Kp), lambda i: (i, 0)),
            pl.BlockSpec((Kp, Coutp), lambda i: (0, 0)),
            pl.BlockSpec((1, Coutp), lambda i: (0, 0)),
            pl.BlockSpec((1, Coutp), lambda i: (0, 0)),
        ],
        out_specs=pl.BlockSpec((tm, Cout), lambda i: (i, 0)),
        compiler_params=cparams,
    )(patches, w2d, a, b)

    out = out_flat[:M].reshape(N, Ho, Wo, Cout)
    return jnp.transpose(out, (0, 3, 1, 2))


def conv_br_reference(x_nchw, weight_oihw, gamma, beta, *,
                      stride=1, padding=0, dilation=1, eps=1e-5):
    """Pure-JAX reference matching PyTorch ConvBR.forward (BN in train mode)."""
    y = lax.conv_general_dilated(
        x_nchw.astype(jnp.float32), weight_oihw.astype(jnp.float32),
        window_strides=(stride, stride),
        padding=[(padding, padding), (padding, padding)],
        rhs_dilation=(dilation, dilation),
        dimension_numbers=("NCHW", "OIHW", "NCHW"),
        precision=lax.Precision.HIGHEST)
    mean = jnp.mean(y, axis=(0, 2, 3), keepdims=True)
    var = jnp.mean((y - mean) ** 2, axis=(0, 2, 3), keepdims=True)
    y = (y - mean) * lax.rsqrt(var + eps)
    y = y * gamma.reshape(1, -1, 1, 1) + beta.reshape(1, -1, 1, 1)
    return jnp.maximum(y, 0.0)


if __name__ == "__main__":
    # ConvBR(in_channel=4, out_channel=8, kernel_size=3, stride=1, padding=1)
    N, Cin, H, W = 2, 4, 16, 16
    Cout, Ksz = 8, 3
    stride, padding, dilation = 1, 1, 1

    key = jax.random.PRNGKey(0)
    kx, kw, kg, kb = jax.random.split(key, 4)
    x = jax.random.normal(kx, (N, Cin, H, W), dtype=jnp.float32)
    weight = 0.1 * jax.random.normal(kw, (Cout, Cin, Ksz, Ksz), dtype=jnp.float32)
    gamma = 1.0 + 0.1 * jax.random.normal(kg, (Cout,), dtype=jnp.float32)
    beta = 0.1 * jax.random.normal(kb, (Cout,), dtype=jnp.float32)

    fn = jax.jit(functools.partial(conv_br, stride=stride, padding=padding,
                                   dilation=dilation))
    out = jax.block_until_ready(fn(x, weight, gamma, beta))

    ref = conv_br_reference(x, weight, gamma, beta, stride=stride,
                            padding=padding, dilation=dilation)
    assert out.shape == (N, Cout, H, W), out.shape
    max_err = float(jnp.max(jnp.abs(out - ref)))
    assert jnp.allclose(out, ref, atol=1e-4, rtol=1e-4), max_err

    print("KERNEL_OK")
</pallas_src>

<mosaic_0001>
module attributes {stable_mosaic.version = 11 : i64} {
  func.func @_conv_stats_kernel(%arg0: i32, %arg1: memref<256x128xf32, #tpu.memory_space<vmem>>, %arg2: memref<128x128xf32, #tpu.memory_space<vmem>>, %arg3: memref<1x2x128xf32, #tpu.memory_space<vmem>>) attributes {dimension_semantics = [#tpu.dimension_semantics<parallel>], iteration_bounds = array<i64: 2>, scalar_prefetch = 0 : i64, scratch_operands = 0 : i64, tpu.core_type = #tpu.core_type<tc>, window_params = [{transform_indices = @transform_0, window_bounds = array<i64: 256, 128>}, {pipeline_mode = #tpu.pipeline_mode<synchronous>, transform_indices = @transform_1, window_bounds = array<i64: 128, 128>}, {transform_indices = @transform_2, window_bounds = array<i64: 1, 2, 128>}]} {
    %c0 = arith.constant 0 : index
    %c0_0 = arith.constant 0 : index
    %0 = vector.load %arg1[%c0, %c0_0] : memref<256x128xf32, #tpu.memory_space<vmem>>, vector<256x128xf32>
    %c0_1 = arith.constant 0 : index
    %c0_2 = arith.constant 0 : index
    %1 = vector.load %arg2[%c0_1, %c0_2] : memref<128x128xf32, #tpu.memory_space<vmem>>, vector<128x128xf32>
    %cst = arith.constant dense<0.000000e+00> : vector<256x128xf32>
    %2 = tpu.matmul %0, %1, %cst {dimension_numbers = #tpu.dot_dimension_numbers<[1], [0], [0], [1], [0, 0, 1, 1], [], []>} : vector<256x128xf32>, vector<128x128xf32>, vector<256x128xf32> -> vector<256x128xf32>
    %cst_3 = arith.constant dense<0.000000e+00> : vector<128xf32>
    %3 = vector.multi_reduction <add>, %2, %cst_3 [0] : vector<256x128xf32> to vector<128xf32>
    %4 = vector.shape_cast %3 : vector<128xf32> to vector<1x128xf32>
    %5 = arith.mulf %2, %2 : vector<256x128xf32>
    %cst_4 = arith.constant dense<0.000000e+00> : vector<128xf32>
    %6 = vector.multi_reduction <add>, %5, %cst_4 [0] : vector<256x128xf32> to vector<128xf32>
    %7 = vector.shape_cast %6 : vector<128xf32> to vector<1x128xf32>
    %8 = tpu.concatenate %4, %7 in 0 : vector<1x128xf32>, vector<1x128xf32> -> vector<2x128xf32>
    %9 = vector.shape_cast %8 : vector<2x128xf32> to vector<1x2x128xf32>
    %c0_5 = arith.constant 0 : index
    %c0_6 = arith.constant 0 : index
    %c0_7 = arith.constant 0 : index
    %10 = vector.load %arg3[%c0_5, %c0_6, %c0_7] : memref<1x2x128xf32, #tpu.memory_space<vmem>>, vector<1x2x128xf32>
    tpu.vector_store %arg3[%c0_5, %c0_6, %c0_7], %9 {strides = array<i32>} : memref<1x2x128xf32, #tpu.memory_space<vmem>>, vector<1x2x128xf32>,
    return
  }
  func.func @transform_0(%arg0: i32) -> (i32, i32) {
    %c0_i32 = arith.constant 0 : i32
    %c0_i32_0 = arith.constant 0 : i32
    return %arg0, %c0_i32 : i32, i32
  }
  func.func @transform_1(%arg0: i32) -> (i32, i32) {
    %c0_i32 = arith.constant 0 : i32
    %c0_i32_0 = arith.constant 0 : i32
    %c0_i32_1 = arith.constant 0 : i32
    return %c0_i32, %c0_i32_0 : i32, i32
  }
  func.func @transform_2(%arg0: i32) -> (i32, i32, i32) {
    %c0_i32 = arith.constant 0 : i32
    %c0_i32_0 = arith.constant 0 : i32
    %c0_i32_1 = arith.constant 0 : i32
    return %arg0, %c0_i32, %c0_i32_0 : i32, i32, i32
  }
}

module attributes {stable_mosaic.version = 11 : i64} {
  func.func @_conv_bn_relu_kernel(%arg0: i32, %arg1: memref<256x128xf32, #tpu.memory_space<vmem>>, %arg2: memref<128x128xf32, #tpu.memory_space<vmem>>, %arg3: memref<1x128xf32, #tpu.memory_space<vmem>>, %arg4: memref<1x128xf32, #tpu.memory_space<vmem>>, %arg5: memref<256x8xf32, #tpu.memory_space<vmem>>) attributes {dimension_semantics = [#tpu.dimension_semantics<parallel>], iteration_bounds = array<i64: 2>, scalar_prefetch = 0 : i64, scratch_operands = 0 : i64, tpu.core_type = #tpu.core_type<tc>, window_params = [{transform_indices = @transform_0, window_bounds = array<i64: 256, 128>}, {pipeline_mode = #tpu.pipeline_mode<synchronous>, transform_indices = @transform_1, window_bounds = array<i64: 128, 128>}, {pipeline_mode = #tpu.pipeline_mode<synchronous>, transform_indices = @transform_2, window_bounds = array<i64: 1, 128>}, {pipeline_mode = #tpu.pipeline_mode<synchronous>, transform_indices = @transform_3, window_bounds = array<i64: 1, 128>}, {transform_indices = @transform_4, window_bounds = array<i64: 256, 8>}]} {
    %c0 = arith.constant 0 : index
    %c0_0 = arith.constant 0 : index
    %0 = vector.load %arg1[%c0, %c0_0] : memref<256x128xf32, #tpu.memory_space<vmem>>, vector<256x128xf32>
    %c0_1 = arith.constant 0 : index
    %c0_2 = arith.constant 0 : index
    %1 = vector.load %arg2[%c0_1, %c0_2] : memref<128x128xf32, #tpu.memory_space<vmem>>, vector<128x128xf32>
    %cst = arith.constant dense<0.000000e+00> : vector<256x128xf32>
    %2 = tpu.matmul %0, %1, %cst {dimension_numbers = #tpu.dot_dimension_numbers<[1], [0], [0], [1], [0, 0, 1, 1], [], []>} : vector<256x128xf32>, vector<128x128xf32>, vector<256x128xf32> -> vector<256x128xf32>
    %c0_3 = arith.constant 0 : index
    %c0_4 = arith.constant 0 : index
    %3 = vector.load %arg3[%c0_3, %c0_4] : memref<1x128xf32, #tpu.memory_space<vmem>>, vector<1x128xf32>
    %4 = vector.broadcast %3 : vector<1x128xf32> to vector<256x128xf32>
    %5 = arith.mulf %2, %4 : vector<256x128xf32>
    %c0_5 = arith.constant 0 : index
    %c0_6 = arith.constant 0 : index
    %6 = vector.load %arg4[%c0_5, %c0_6] : memref<1x128xf32, #tpu.memory_space<vmem>>, vector<1x128xf32>
    %7 = vector.broadcast %6 : vector<1x128xf32> to vector<256x128xf32>
    %8 = arith.addf %5, %7 : vector<256x128xf32>
    %cst_7 = arith.constant 0.000000e+00 : f32
    %9 = vector.broadcast %cst_7 : f32 to vector<256x128xf32>
    %10 = arith.maximumf %8, %9 : vector<256x128xf32>
    %11 = vector.extract_strided_slice %10 {offsets = [0, 0], sizes = [256, 8], strides = [1, 1]} : vector<256x128xf32> to vector<256x8xf32>
    %c0_8 = arith.constant 0 : index
    %c0_9 = arith.constant 0 : index
    %12 = vector.load %arg5[%c0_8, %c0_9] : memref<256x8xf32, #tpu.memory_space<vmem>>, vector<256x8xf32>
    tpu.vector_store %arg5[%c0_8, %c0_9], %11 {strides = array<i32>} : memref<256x8xf32, #tpu.memory_space<vmem>>, vector<256x8xf32>,
    return
  }
  func.func @transform_0(%arg0: i32) -> (i32, i32) {
    %c0_i32 = arith.constant 0 : i32
    %c0_i32_0 = arith.constant 0 : i32
    return %arg0, %c0_i32 : i32, i32
  }
  func.func @transform_1(%arg0: i32) -> (i32, i32) {
    %c0_i32 = arith.constant 0 : i32
    %c0_i32_0 = arith.constant 0 : i32
    %c0_i32_1 = arith.constant 0 : i32
    return %c0_i32, %c0_i32_0 : i32, i32
  }
  func.func @transform_2(%arg0: i32) -> (i32, i32) {
    %c0_i32 = arith.constant 0 : i32
    %c0_i32_0 = arith.constant 0 : i32
    %c0_i32_1 = arith.constant 0 : i32
    return %c0_i32, %c0_i32_0 : i32, i32
  }
  func.func @transform_3(%arg0: i32) -> (i32, i32) {
    %c0_i32 = arith.constant 0 : i32
    %c0_i32_0 = arith.constant 0 : i32
    %c0_i32_1 = arith.constant 0 : i32
    return %c0_i32, %c0_i32_0 : i32, i32
  }
  func.func @transform_4(%arg0: i32) -> (i32, i32) {
    %c0_i32 = arith.constant 0 : i32
    %c0_i32_0 = arith.constant 0 : i32
    return %arg0, %c0_i32 : i32, i32
  }
}

</mosaic_0001>

<bundles_post_ra>
// kernel: conv_br.2
= control target key start
LH: loop header
LB: loop body
LE: loop exit
PB: predicated region body
PF: predicated region fallthrough
CT: control target
= control target key end

     0   :  { %s780_s9 = smov 0   ;;  %s899_s0 = inlined_call_operand.vmem [shape: f32[512,128], index: 0, kind: input, shape index: {}]   ;;  %s900_s1 = inlined_call_operand.vmem [shape: f32[128,128], index: 1, kind: input, shape index: {}]   ;;  %s901_s2 = inlined_call_operand.vmem [shape: f32[2,2,128], index: 2, kind: output, shape index: {}]  }
   0x1 LB: > { %s786_s10 = sadd.s32 4294967295, %s763_s9   ;;  %p583_p0 = scmp.ge.s32.totalorder %s763_s9, 1  ;;  %s763_s9 = sphi %s780_s9, %s12_s9  }
   0x2   : > { %p113_p1 = scmp.lt.s32.totalorder %s763_s9, 3 }
   0x4   : > { %p114_p2 = pnand %p583_p0, %p113_p1 }
   0x5   : > { %s584_s15 = sshll.u32 (!%p114_p2), %s786_s10, 5  ;;  %p140_p4 = scmp.lt.s32.totalorder (!%p114_p2), %s786_s10, 1 }
   0x6   : > { %117 = sbr.rel (%p114_p2) target bundleno = 319 (0x13f), region = 28  ;;  %p135_p3 = scmp.lt.s32.totalorder (!%p114_p2), %s584_s15, 63 }
   0xb   : > { %v191_v0 = vld [vmem:[%s900_s1 + $0x78] sm:$0xff]  ;;  %v190_v1 = vld [vmem:[%s900_s1 + $0x70] sm:$0xff]  ;;  %v189_v2 = vld [vmem:[%s900_s1 + $0x68] sm:$0xff]  ;;  %s903_s15 = smov (!%p135_p3, %s584_s15), 63  ;;  %s905_s10 = smov (!%p140_p4, %s786_s10), 1  ;;  %vm523_vm0 = vcmask 1040384  }
   0xc   : > { %637 = vmatprep.subr.mxu0 %v191_v0  ;;  %717 = vmatprep.subr.mxu1 %v191_v0  ;;  %v188_v3 = vld [vmem:[%s900_s1 + $0x60] sm:$0xff]  ;;  %s585_s20 = sshll.u32 %s903_s15, 3  ;;  %v187_v4 = vld [vmem:[%s900_s1 + $0x58] sm:$0xff]  ;;  %v186_v6 = vld [vmem:[%s900_s1 + $0x50] sm:$0xff]  ;;  %s586_s22 = sshll.u32 %s905_s10, 1 }
   0xd   : > { %638 = vmatpush3.msra.mxu0 %v191_v0  ;;  %733 = vmatpush3.msra.mxu1 %v191_v0  ;;  %s809_s25 = scalar_lea.vmem %s899_s0, %s585_s20  ;;  %v185_v7 = vld [vmem:[%s900_s1 + $0x48] sm:$0xff]  ;;  %v184_v8 = vld [vmem:[%s900_s1 + $0x40] sm:$0xff]  ;;  %v183_v9 = vld [vmem:[%s900_s1 + $0x38] sm:$0xff] }
   0xe   : > { %639 = vmatprep.subr.mxu0 %v190_v1  ;;  %718 = vmatprep.subr.mxu1 %v190_v1  ;;  %v144_v5 = vld [vmem:[%s809_s25] sm:$0xff]  ;;  %v182_v10 = vld [vmem:[%s900_s1 + $0x30] sm:$0xff]  ;;  %v181_v11 = vld [vmem:[%s900_s1 + $0x28] sm:$0xff] }
   0xf   : > { %640 = vmatpush3.msra.mxu0 %v190_v1  ;;  %734 = vmatpush3.msra.mxu1 %v190_v1  ;;  %v180_v12 = vld [vmem:[%s900_s1 + $0x20] sm:$0xff]  ;;  %v179_v13 = vld [vmem:[%s900_s1 + $0x18] sm:$0xff]  ;;  %v178_v14 = vld [vmem:[%s900_s1 + $0x10] sm:$0xff] }
  0x10   : > { %641 = vmatprep.subr.mxu0 %v189_v2  ;;  %719 = vmatprep.subr.mxu1 %v189_v2  ;;  %v177_v15 = vld [vmem:[%s900_s1 + $0x8] sm:$0xff]  ;;  %v176_v16 = vld [vmem:[%s900_s1] sm:$0xff]  ;;  %v146_v18 = vld [vmem:[%s809_s25 + $0x10] sm:$0xff] }
  0x11   : > { %642 = vmatpush3.msra.mxu0 %v189_v2  ;;  %735 = vmatpush3.msra.mxu1 %v189_v2  ;;  %v145_v17 = vld [vmem:[%s809_s25 + $0x8] sm:$0xff]  ;;  %v160_v19 = vld [vmem:[%s809_s25 + $0x80] sm:$0xff]  ;;  %v162_v21 = vld [vmem:[%s809_s25 + $0x90] sm:$0xff] }
  0x12   : > { %643 = vmatprep.subr.mxu0 %v188_v3  ;;  %720 = vmatprep.subr.mxu1 %v188_v3  ;;  %v161_v20 = vld [vmem:[%s809_s25 + $0x88] sm:$0xff]  ;;  %v147_v22 = vld [vmem:[%s809_s25 + $0x18] sm:$0xff]  ;;  %v148_v23 = vld [vmem:[%s809_s25 + $0x20] sm:$0xff] }
  0x13   : > { %644 = vmatpush3.msra.mxu0 %v188_v3  ;;  %669 = vmatprep.mubr.f32.mxu0 %v144_v5  ;;  %v163_v24 = vld [vmem:[%s809_s25 + $0x98] sm:$0xff]  ;;  %v164_v25 = vld [vmem:[%s809_s25 + $0xa0] sm:$0xff]  ;;  %v149_v26 = vld [vmem:[%s809_s25 + $0x28] sm:$0xff] }
  0x14   : > { %645 = vmatprep.subr.mxu0 %v187_v4  ;;  %736 = vmatpush3.msra.mxu1 %v188_v3  ;;  %v150_v27 = vld [vmem:[%s809_s25 + $0x30] sm:$0xff]  ;;  %v165_v28 = vld [vmem:[%s809_s25 + $0xa8] sm:$0xff]  ;;  %v151_v30 = vld [vmem:[%s809_s25 + $0x38] sm:$0xff] }
  0x15   : > { %646 = vmatpush3.msra.mxu0 %v187_v4  ;;  %721 = vmatprep.subr.mxu1 %v187_v4  ;;  %v166_v29 = vld [vmem:[%s809_s25 + $0xb0] sm:$0xff]  ;;  %v152_v31 = vld [vmem:[%s809_s25 + $0x40] sm:$0xff]  ;;  %v167_v32 = vld [vmem:[%s809_s25 + $0xb8] sm:$0xff] }
  0x16   : > { %647 = vmatprep.subr.mxu0 %v186_v6  ;;  %737 = vmatpush3.msra.mxu1 %v187_v4  ;;  %v168_v33 = vld [vmem:[%s809_s25 + $0xc0] sm:$0xff]  ;;  %v153_v34 = vld [vmem:[%s809_s25 + $0x48] sm:$0xff]  ;;  %v154_v35 = vld [vmem:[%s809_s25 + $0x50] sm:$0xff] }
  0x17   : > { %648 = vmatpush3.msra.mxu0 %v186_v6  ;;  %722 = vmatprep.subr.mxu1 %v186_v6  ;;  %v169_v36 = vld [vmem:[%s809_s25 + $0xc8] sm:$0xff]  ;;  %v170_v37 = vld [vmem:[%s809_s25 + $0xd0] sm:$0xff]  ;;  %v155_v38 = vld [vmem:[%s809_s25 + $0x58] sm:$0xff] }
  0x18   : > { %649 = vmatprep.subr.mxu0 %v185_v7  ;;  %738 = vmatpush3.msra.mxu1 %v186_v6  ;;  %v156_v39 = vld [vmem:[%s809_s25 + $0x60] sm:$0xff]  ;;  %v171_v40 = vld [vmem:[%s809_s25 + $0xd8] sm:$0xff]  ;;  %v157_v42 = vld [vmem:[%s809_s25 + $0x68] sm:$0xff] }
  0x19   : > { %650 = vmatpush3.msra.mxu0 %v185_v7  ;;  %723 = vmatprep.subr.mxu1 %v185_v7  ;;  %v172_v41 = vld [vmem:[%s809_s25 + $0xe0] sm:$0xff]  ;;  %v158_v43 = vld [vmem:[%s809_s25 + $0x70] sm:$0xff]  ;;  %v173_v44 = vld [vmem:[%s809_s25 + $0xe8] sm:$0xff] }
  0x1a   : > { %651 = vmatprep.subr.mxu0 %v184_v8  ;;  %739 = vmatpush3.msra.mxu1 %v185_v7  ;;  %v174_v45 = vld [vmem:[%s809_s25 + $0xf0] sm:$0xff]  ;;  %v159_v46 = vld [vmem:[%s809_s25 + $0x78] sm:$0xff] }
  0x1b   : > { %652 = vmatpush3.msra.mxu0 %v184_v8  ;;  %724 = vmatprep.subr.mxu1 %v184_v8  ;;  %v175_v47 = vld [vmem:[%s809_s25 + $0xf8] sm:$0xff]  ;;  %s143_s25 = scalar_lea.vmem %s901_s2, %s586_s22 }
  0x1c   : > { %653 = vmatprep.subr.mxu0 %v183_v9  ;;  %740 = vmatpush3.msra.mxu1 %v184_v8 }
  0x1d   : > { %654 = vmatpush3.msra.mxu0 %v183_v9  ;;  %725 = vmatprep.subr.mxu1 %v183_v9 }
  0x1e   : > { %655 = vmatprep.subr.mxu0 %v182_v10  ;;  %741 = vmatpush3.msra.mxu1 %v183_v9 }
  0x1f   : > { %656 = vmatpush3.msra.mxu0 %v182_v10  ;;  %726 = vmatprep.subr.mxu1 %v182_v10 }
  0x20   : > { %657 = vmatprep.subr.mxu0 %v181_v11  ;;  %742 = vmatpush3.msra.mxu1 %v182_v10 }
  0x21   : > { %658 = vmatpush3.msra.mxu0 %v181_v11  ;;  %727 = vmatprep.subr.mxu1 %v181_v11 }
  0x22   : > { %659 = vmatprep.subr.mxu0 %v180_v12  ;;  %743 = vmatpush3.msra.mxu1 %v181_v11 }
  0x23   : > { %660 = vmatpush3.msra.mxu0 %v180_v12  ;;  %728 = vmatprep.subr.mxu1 %v180_v12 }
  0x24   : > { %661 = vmatprep.subr.mxu0 %v179_v13  ;;  %744 = vmatpush3.msra.mxu1 %v180_v12 }
  0x25   : > { %662 = vmatpush3.msra.mxu0 %v179_v13  ;;  %729 = vmatprep.subr.mxu1 %v179_v13 }
  0x26   : > { %663 = vmatprep.subr.mxu0 %v178_v14  ;;  %745 = vmatpush3.msra.mxu1 %v179_v13 }
  0x27   : > { %664 = vmatpush3.msra.mxu0 %v178_v14  ;;  %730 = vmatprep.subr.mxu1 %v178_v14 }
  0x28   : > { %665 = vmatprep.subr.mxu0 %v177_v15  ;;  %746 = vmatpush3.msra.mxu1 %v178_v14 }
  0x29   : > { %666 = vmatpush3.msra.mxu0 %v177_v15  ;;  %731 = vmatprep.subr.mxu1 %v177_v15 }
  0x2a   : > { %667 = vmatprep.subr.mxu0 %v176_v16  ;;  %747 = vmatpush3.msra.mxu1 %v177_v15 }
  0x2b   : > { %668 = vmatpush3.msra.mxu0 %v176_v16  ;;  %732 = vmatprep.subr.mxu1 %v176_v16 }
  0x2c   : > { %670 = vmatmul.mubr.f32.vlgmr.msra.gmra.mxu0 %v145_v17  ;;  %748 = vmatpush3.msra.mxu1 %v176_v16 }
  0x2d   : > { %672 = vmatprep.mubr.f32.mxu0 %v146_v18  ;;  %693 = vmatprep.mubr.f32.mxu1 %v160_v19 }
  0x2e   : > { %694 = vmatmul.mubr.f32.vlgmr.msra.gmra.mxu1 %v161_v20 }
  0x2f   : > { %696 = vmatprep.mubr.f32.mxu1 %v162_v21 }
  0x30   : > { %673 = vmatmul.mubr.f32.gmra.mxu0 %v147_v22 }
  0x31   : > { %675 = vmatprep.mubr.f32.mxu0 %v148_v23 }
  0x32   : > { %697 = vmatmul.mubr.f32.gmra.mxu1 %v163_v24 }
  0x33   : > { %699 = vmatprep.mubr.f32.mxu1 %v164_v25 }
  0x34   : > { %676 = vmatmul.mubr.f32.gmra.mxu0 %v149_v26 }
  0x35   : > { %678 = vmatprep.mubr.f32.mxu0 %v150_v27 }
  0x36   : > { %700 = vmatmul.mubr.f32.gmra.mxu1 %v165_v28 }
  0x37   : > { %702 = vmatprep.mubr.f32.mxu1 %v166_v29 }
  0x38   : > { %679 = vmatmul.mubr.f32.gmra.mxu0 %v151_v30 }
  0x39   : > { %681 = vmatprep.mubr.f32.mxu0 %v152_v31 }
  0x3a   : > { %703 = vmatmul.mubr.f32.gmra.mxu1 %v167_v32 }
  0x3b   : > { %705 = vmatprep.mubr.f32.mxu1 %v168_v33 }
  0x3c   : > { %682 = vmatmul.mubr.f32.gmra.mxu0 %v153_v34 }
  0x3d   : > { %684 = vmatprep.mubr.f32.mxu0 %v154_v35 }
  0x3e   : > { %706 = vmatmul.mubr.f32.gmra.mxu1 %v169_v36 }
  0x3f   : > { %708 = vmatprep.mubr.f32.mxu1 %v170_v37 }
  0x40   : > { %685 = vmatmul.mubr.f32.gmra.mxu0 %v155_v38 }
  0x41   : > { %687 = vmatprep.mubr.f32.mxu0 %v156_v39 }
  0x42   : > { %709 = vmatmul.mubr.f32.gmra.mxu1 %v171_v40 }
  0x43   : > { %711 = vmatprep.mubr.f32.mxu1 %v172_v41 }
  0x44   : > { %688 = vmatmul.mubr.f32.gmra.mxu0 %v157_v42 }
  0x45   : > { %690 = vmatprep.mubr.f32.mxu0 %v158_v43 }
  0x46   : > { %712 = vmatmul.mubr.f32.gmra.mxu1 %v173_v44 }
  0x47   : > { %714 = vmatprep.mubr.f32.mxu1 %v174_v45 }
  0x48   : > { %691 = vmatmul.mubr.f32.gmra.mxu0 %v159_v46 }
  0x4a   : > { %715 = vmatmul.mubr.f32.gmra.mxu1 %v175_v47 }
  0xec   : > { %v671_v48 = vpop.f32.mrf.mxu0 }
  0xed   : > { %v455_v54 = vmul.f32 %v671_v48, %v671_v48 }
  0xee   : > { %v258_v49 = vpop.f32.mrf.mxu0  ;;  %v876_v50 = vpop.f32.mrf.mxu1 }
  0xef   : > { %v454_v51 = vmul.f32 %v258_v49, %v258_v49  ;;  %v417_v55 = vadd.f32 %v671_v48, %v258_v49 }
  0xf0   : > { %v674_v52 = vpop.f32.mrf.mxu0  ;;  %v878_v53 = vpop.f32.mrf.mxu1 }
  0xf1   : > { %v486_v57 = vadd.f32 %v455_v54, %v454_v51  ;;  %v457_v62 = vmul.f32 %v674_v52, %v674_v52 }
  0xf2   : > { %v268_v56 = vpop.f32.mrf.mxu0  ;;  %v880_v61 = vpop.f32.mrf.mxu1 }
  0xf3   : > { %v418_v58 = vadd.f32 %v417_v55, %v268_v56  ;;  %v456_v59 = vmul.f32 %v268_v56, %v268_v56 }
  0xf4   : > { %v677_v60 = vpop.f32.mrf.mxu0  ;;  %v348_v6 = vpop.f32.mrf.mxu1 }
  0xf5   : > { %v487_v63 = vadd.f32 %v486_v57, %v456_v59  ;;  %v419_v0 = vadd.f32 %v674_v52, %v418_v58  ;;  %v459_v7 = vmul.f32 %v677_v60, %v677_v60  ;;  %v470_v58 = vmul.f32 %v878_v53, %v878_v53 }
  0xf6   : > { %v278_v1 = vpop.f32.mrf.mxu0  ;;  %v701_v15 = vpop.f32.mrf.mxu1 }
  0xf7   : > { %v420_v2 = vadd.f32 %v419_v0, %v278_v1  ;;  %v458_v3 = vmul.f32 %v278_v1, %v278_v1  ;;  %v488_v4 = vadd.f32 %v487_v63, %v457_v62  ;;  %v472_v1 = vmul.f32 %v348_v6, %v348_v6 }
  0xf8   : > { %v680_v5 = vpop.f32.mrf.mxu0  ;;  %v358_v24 = vpop.f32.mrf.mxu1 }
  0xf9   : > { %v489_v8 = vadd.f32 %v488_v4, %v458_v3  ;;  %v421_v9 = vadd.f32 %v677_v60, %v420_v2  ;;  %v461_v16 = vmul.f32 %v680_v5, %v680_v5  ;;  %v471_v60 = vmul.f32 %v876_v50, %v876_v50 }
  0xfa   : > { %v288_v10 = vpop.f32.mrf.mxu0  ;;  %v704_v33 = vpop.f32.mrf.mxu1  ;;  %v473_v4 = vmul.f32 %v880_v61, %v880_v61 }
  0xfb   : > { %v422_v11 = vadd.f32 %v421_v9, %v288_v10  ;;  %v460_v12 = vmul.f32 %v288_v10, %v288_v10  ;;  %v490_v13 = vadd.f32 %v489_v8, %v459_v7  ;;  %v474_v9 = vmul.f32 %v358_v24, %v358_v24 }
  0xfc   : > { %v683_v14 = vpop.f32.mrf.mxu0  ;;  %v368_v42 = vpop.f32.mrf.mxu1 }
  0xfd   : > { %v491_v17 = vadd.f32 %v490_v13, %v460_v12  ;;  %v423_v18 = vadd.f32 %v680_v5, %v422_v11  ;;  %v463_v25 = vmul.f32 %v683_v14, %v683_v14  ;;  %v475_v11 = vmul.f32 %v701_v15, %v701_v15 }
  0xfe   : > { %v298_v19 = vpop.f32.mrf.mxu0  ;;  %v707_v51 = vpop.f32.mrf.mxu1 }
  0xff   : > { %v424_v20 = vadd.f32 %v423_v18, %v298_v19  ;;  %v462_v21 = vmul.f32 %v298_v19, %v298_v19  ;;  %v492_v22 = vadd.f32 %v491_v17, %v461_v16  ;;  %v476_v16 = vmul.f32 %v368_v42, %v368_v42 }
 0x100   : > { %v686_v23 = vpop.f32.mrf.mxu0  ;;  %v378_v59 = vpop.f32.mrf.mxu1 }
 0x101   : > { %v493_v26 = vadd.f32 %v492_v22, %v462_v21  ;;  %v425_v27 = vadd.f32 %v683_v14, %v424_v20  ;;  %v465_v34 = vmul.f32 %v686_v23, %v686_v23  ;;  %v478_v21 = vmul.f32 %v378_v59, %v378_v59 }
 0x102   : > { %v308_v28 = vpop.f32.mrf.mxu0  ;;  %v710_v3 = vpop.f32.mrf.mxu1 }
 0x103   : > { %v426_v29 = vadd.f32 %v425_v27, %v308_v28  ;;  %v464_v30 = vmul.f32 %v308_v28, %v308_v28  ;;  %v494_v31 = vadd.f32 %v493_v26, %v463_v25  ;;  %v479_v25 = vmul.f32 %v707_v51, %v707_v51 }
 0x104   : > { %v689_v32 = vpop.f32.mrf.mxu0  ;;  %v388_v10 = vpop.f32.mrf.mxu1 }
 0x105   : > { %v495_v35 = vadd.f32 %v494_v31, %v464_v30  ;;  %v427_v36 = vadd.f32 %v686_v23, %v426_v29  ;;  %v467_v43 = vmul.f32 %v689_v32, %v689_v32  ;;  %v480_v27 = vmul.f32 %v388_v10, %v388_v10 }
 0x106   : > { %v318_v37 = vpop.f32.mrf.mxu0  ;;  %v713_v17 = vpop.f32.mrf.mxu1  ;;  %v481_v30 = vmul.f32 %v710_v3, %v710_v3 }
 0x107   : > { %v428_v38 = vadd.f32 %v427_v36, %v318_v37  ;;  %v466_v39 = vmul.f32 %v318_v37, %v318_v37  ;;  %v496_v40 = vadd.f32 %v495_v35, %v465_v34 }
 0x108   : > { %v692_v41 = vpop.f32.mrf.mxu0  ;;  %v398_v23 = vpop.f32.mrf.mxu1 }
 0x109   : > { %v497_v44 = vadd.f32 %v496_v40, %v466_v39  ;;  %v429_v45 = vadd.f32 %v689_v32, %v428_v38  ;;  %v469_v52 = vmul.f32 %v692_v41, %v692_v41  ;;  %v482_v34 = vmul.f32 %v398_v23, %v398_v23 }
 0x10a   : > { %v328_v46 = vpop.f32.mrf.mxu0  ;;  %v716_v29 = vpop.f32.mrf.mxu1 }
 0x10b   : > { %v430_v47 = vadd.f32 %v429_v45, %v328_v46  ;;  %v468_v48 = vmul.f32 %v328_v46, %v328_v46  ;;  %v498_v49 = vadd.f32 %v497_v44, %v467_v43 }
 0x10c   : > { %v408_v36 = vpop.f32.mrf.mxu1 }
 0x10d   : > { %v431_v54 = vadd.f32 %v692_v41, %v430_v47  ;;  %v499_v55 = vadd.f32 %v498_v49, %v468_v48  ;;  %v484_v40 = vmul.f32 %v408_v36, %v408_v36 }
 0x10f   : > { %v500_v56 = vadd.f32 %v499_v55, %v469_v52  ;;  %v432_v57 = vadd.f32 %v431_v54, %v878_v53 }
 0x111   : > { %v501_v62 = vadd.f32 %v500_v56, %v470_v58  ;;  %v433_v63 = vadd.f32 %v876_v50, %v432_v57 }
 0x113   : > { %v434_v0 = vadd.f32 %v433_v63, %v348_v6  ;;  %v502_v2 = vadd.f32 %v501_v62, %v471_v60  ;;  %v477_v6 = vmul.f32 %v704_v33, %v704_v33 }
 0x115   : > { %v503_v5 = vadd.f32 %v502_v2, %v472_v1  ;;  %v435_v7 = vadd.f32 %v880_v61, %v434_v0 }
 0x117   : > { %v436_v8 = vadd.f32 %v435_v7, %v358_v24  ;;  %v504_v53 = vadd.f32 %v503_v5, %v473_v4 }
 0x119   : > { %v505_v12 = vadd.f32 %v504_v53, %v474_v9  ;;  %v437_v13 = vadd.f32 %v701_v15, %v436_v8 }
 0x11b   : > { %v438_v14 = vadd.f32 %v437_v13, %v368_v42  ;;  %v506_v50 = vadd.f32 %v505_v12, %v475_v11  ;;  %v485_v42 = vmul.f32 %v716_v29, %v716_v29 }
 0x11d   : > { %v507_v18 = vadd.f32 %v506_v50, %v476_v16  ;;  %v439_v19 = vadd.f32 %v704_v33, %v438_v14  ;;  %v483_v33 = vmul.f32 %v713_v17, %v713_v17 }
 0x11f   : > { %v440_v20 = vadd.f32 %v439_v19, %v378_v59  ;;  %v508_v22 = vadd.f32 %v507_v18, %v477_v6 }
 0x121   : > { %v509_v61 = vadd.f32 %v508_v22, %v478_v21  ;;  %v441_v26 = vadd.f32 %v707_v51, %v440_v20 }
 0x123   : > { %v442_v24 = vadd.f32 %v441_v26, %v388_v10  ;;  %v510_v28 = vadd.f32 %v509_v61, %v479_v25 }
 0x125   : > { %v511_v15 = vadd.f32 %v510_v28, %v480_v27  ;;  %v443_v31 = vadd.f32 %v710_v3, %v442_v24 }
 0x127   : > { %v444_v32 = vadd.f32 %v443_v31, %v398_v23  ;;  %v512_v35 = vadd.f32 %v511_v15, %v481_v30 }
 0x129   : > { %v513_v37 = vadd.f32 %v512_v35, %v482_v34  ;;  %v445_v38 = vadd.f32 %v713_v17, %v444_v32 }
 0x12b   : > { %v446_v39 = vadd.f32 %v445_v38, %v408_v36  ;;  %v514_v41 = vadd.f32 %v513_v37, %v483_v33 }
 0x12d   : > { %v447_v43 = vadd.f32 %v716_v29, %v446_v39  ;;  %v515_v44 = vadd.f32 %v514_v41, %v484_v40 }
 0x12f   : > { %v448_v45 = vrot.slane %v447_v43, 4  ;;  %v516_v46 = vadd.f32 %v515_v44, %v485_v42 }
 0x131   : > { %v449_v47 = vadd.f32 %v448_v45, %v447_v43  ;;  %v517_v48 = vrot.slane %v516_v46, 4 }
 0x133   : > { %v450_v49 = vrot.slane %v449_v47, 2  ;;  %v518_v51 = vadd.f32 %v517_v48, %v516_v46 }
 0x135   : > { %v451_v52 = vadd.f32 %v450_v49, %v449_v47  ;;  %v519_v54 = vrot.slane %v518_v51, 2 }
 0x137   : > { %v452_v55 = vrot.slane %v451_v52, 1  ;;  %v520_v56 = vadd.f32 %v519_v54, %v518_v51 }
 0x139   : > { %v521_v57 = vrot.slane %v520_v56, 1  ;;  %v453_v58 = vadd.f32 %v452_v55, %v451_v52 }
 0x13b   : > { %v522_v59 = vadd.f32 %v521_v57, %v520_v56 }
 0x13d   : > { %v524_v60 = vsel %vm523_vm0, %v453_v58, %v522_v59 }
 0x13e   : > { %525 = vst [vmem:[%s143_s25] sm:$0x3] %v524_v60 }
 0x13f PF: > { %s12_s9 = sadd.s32 1, %s763_s9  }
 0x140   : > { %p9_p5 = scmp.ge.s32.totalorder %s12_s9, 4  }
 0x142   :  { %11 = sbr.rel (!%p9_p5) target bundleno = 1 (0x1), region = 58 }

// kernel: conv_br.3
= control target key start
LH: loop header
LB: loop body
LE: loop exit
PB: predicated region body
PF: predicated region fallthrough
CT: control target
= control target key end

     0   :  { %s887_s15 = smov 0   ;;  %s1135_s0 = inlined_call_operand.vmem [shape: f32[512,128], index: 0, kind: input, shape index: {}]   ;;  %s1136_s1 = inlined_call_operand.vmem [shape: f32[128,128], index: 1, kind: input, shape index: {}]   ;;  %s1137_s2 = inlined_call_operand.vmem [shape: f32[1,128], index: 2, kind: input, shape index: {}]   ;;  %s1138_s3 = inlined_call_operand.vmem [shape: f32[1,128], index: 3, kind: input, shape index: {}]   ;;  %s1139_s4 = inlined_call_operand.vmem [shape: f32[512,8], index: 4, kind: output, shape index: {}]  }
   0x1 LB: > { %s673_s16 = sadd.s32 4294967295, %s860_s15   ;;  %p677_p0 = scmp.ge.s32.totalorder %s860_s15, 1  ;;  %s860_s15 = sphi %s887_s15, %s14_s15  }
   0x2   : > { %p163_p1 = scmp.lt.s32.totalorder %s860_s15, 3 }
   0x4   : > { %p164_p2 = pnand %p677_p0, %p163_p1 }
   0x5   : > { %s678_s7 = sshll.u32 (!%p164_p2), %s673_s16, 5 }
   0x6   : > { %167 = sbr.rel (%p164_p2) target bundleno = 275 (0x113), region = 36  ;;  %p190_p3 = scmp.lt.s32.totalorder (!%p164_p2), %s678_s7, 63 }
   0xb   : > { %v248_v0 = vld [vmem:[%s1136_s1 + $0x78] sm:$0xff]  ;;  %v247_v1 = vld [vmem:[%s1136_s1 + $0x70] sm:$0xff]  ;;  %v246_v2 = vld [vmem:[%s1136_s1 + $0x68] sm:$0xff]  ;;  %s1141_s7 = smov (!%p190_p3, %s678_s7), 63  ;;  %vm584_vm0 = vcmask 64512  }
   0xc   : > { %734 = vmatprep.subr.mxu0 %v248_v0  ;;  %814 = vmatprep.subr.mxu1 %v248_v0  ;;  %v245_v3 = vld [vmem:[%s1136_s1 + $0x60] sm:$0xff]  ;;  %v244_v4 = vld [vmem:[%s1136_s1 + $0x58] sm:$0xff]  ;;  %v243_v5 = vld [vmem:[%s1136_s1 + $0x50] sm:$0xff]  ;;  %s679_s21 = sshll.u32 %s1141_s7, 3 }
   0xd   : > { %735 = vmatpush3.msra.mxu0 %v248_v0  ;;  %830 = vmatpush3.msra.mxu1 %v248_v0  ;;  %v242_v6 = vld [vmem:[%s1136_s1 + $0x48] sm:$0xff]  ;;  %v241_v7 = vld [vmem:[%s1136_s1 + $0x40] sm:$0xff]  ;;  %v240_v8 = vld [vmem:[%s1136_s1 + $0x38] sm:$0xff]  ;;  %s950_s26 = scalar_lea.vmem %s1135_s0, %s679_s21  ;;  %s1008_s10 = scalar_lea.vmem %s1139_s4, %s679_s21 }
   0xe   : > { %736 = vmatprep.subr.mxu0 %v247_v1  ;;  %815 = vmatprep.subr.mxu1 %v247_v1  ;;  %v239_v9 = vld [vmem:[%s1136_s1 + $0x30] sm:$0xff]  ;;  %v238_v10 = vld [vmem:[%s1136_s1 + $0x28] sm:$0xff]  ;;  %v237_v11 = vld [vmem:[%s1136_s1 + $0x20] sm:$0xff] }
   0xf   : > { %737 = vmatpush3.msra.mxu0 %v247_v1  ;;  %831 = vmatpush3.msra.mxu1 %v247_v1  ;;  %v236_v12 = vld [vmem:[%s1136_s1 + $0x18] sm:$0xff]  ;;  %v235_v13 = vld [vmem:[%s1136_s1 + $0x10] sm:$0xff]  ;;  %v234_v14 = vld [vmem:[%s1136_s1 + $0x8] sm:$0xff] }
  0x10   : > { %738 = vmatprep.subr.mxu0 %v246_v2  ;;  %816 = vmatprep.subr.mxu1 %v246_v2  ;;  %v233_v15 = vld [vmem:[%s1136_s1] sm:$0xff]  ;;  %v202_v18 = vld [vmem:[%s950_s26 + $0x8] sm:$0xff]  ;;  %v203_v20 = vld [vmem:[%s950_s26 + $0x10] sm:$0xff] }
  0x11   : > { %739 = vmatpush3.msra.mxu0 %v246_v2  ;;  %832 = vmatpush3.msra.mxu1 %v246_v2  ;;  %v201_v16 = vld [vmem:[%s950_s26] sm:$0xff]  ;;  %v218_v19 = vld [vmem:[%s950_s26 + $0x88] sm:$0xff]  ;;  %v219_v21 = vld [vmem:[%s950_s26 + $0x90] sm:$0xff] }
  0x12   : > { %740 = vmatprep.subr.mxu0 %v245_v3  ;;  %817 = vmatprep.subr.mxu1 %v245_v3  ;;  %v217_v17 = vld [vmem:[%s950_s26 + $0x80] sm:$0xff]  ;;  %v204_v22 = vld [vmem:[%s950_s26 + $0x18] sm:$0xff]  ;;  %v206_v26 = vld [vmem:[%s950_s26 + $0x28] sm:$0xff] }
  0x13   : > { %741 = vmatpush3.msra.mxu0 %v245_v3  ;;  %833 = vmatpush3.msra.mxu1 %v245_v3  ;;  %v220_v23 = vld [vmem:[%s950_s26 + $0x98] sm:$0xff]  ;;  %v205_v24 = vld [vmem:[%s950_s26 + $0x20] sm:$0xff]  ;;  %v222_v27 = vld [vmem:[%s950_s26 + $0xa8] sm:$0xff] }
  0x14   : > { %742 = vmatprep.subr.mxu0 %v244_v4  ;;  %818 = vmatprep.subr.mxu1 %v244_v4  ;;  %v221_v25 = vld [vmem:[%s950_s26 + $0xa0] sm:$0xff]  ;;  %v207_v28 = vld [vmem:[%s950_s26 + $0x30] sm:$0xff]  ;;  %v208_v30 = vld [vmem:[%s950_s26 + $0x38] sm:$0xff] }
  0x15   : > { %743 = vmatpush3.msra.mxu0 %v244_v4  ;;  %834 = vmatpush3.msra.mxu1 %v244_v4  ;;  %v223_v29 = vld [vmem:[%s950_s26 + $0xb0] sm:$0xff]  ;;  %v224_v31 = vld [vmem:[%s950_s26 + $0xb8] sm:$0xff]  ;;  %v209_v32 = vld [vmem:[%s950_s26 + $0x40] sm:$0xff] }
  0x16   : > { %744 = vmatprep.subr.mxu0 %v243_v5  ;;  %819 = vmatprep.subr.mxu1 %v243_v5  ;;  %v225_v33 = vld [vmem:[%s950_s26 + $0xc0] sm:$0xff]  ;;  %v210_v34 = vld [vmem:[%s950_s26 + $0x48] sm:$0xff]  ;;  %v211_v36 = vld [vmem:[%s950_s26 + $0x50] sm:$0xff] }
  0x17   : > { %745 = vmatpush3.msra.mxu0 %v243_v5  ;;  %835 = vmatpush3.msra.mxu1 %v243_v5  ;;  %v226_v35 = vld [vmem:[%s950_s26 + $0xc8] sm:$0xff]  ;;  %v227_v37 = vld [vmem:[%s950_s26 + $0xd0] sm:$0xff]  ;;  %v212_v38 = vld [vmem:[%s950_s26 + $0x58] sm:$0xff] }
  0x18   : > { %746 = vmatprep.subr.mxu0 %v242_v6  ;;  %820 = vmatprep.subr.mxu1 %v242_v6  ;;  %v228_v39 = vld [vmem:[%s950_s26 + $0xd8] sm:$0xff]  ;;  %v213_v40 = vld [vmem:[%s950_s26 + $0x60] sm:$0xff]  ;;  %v214_v42 = vld [vmem:[%s950_s26 + $0x68] sm:$0xff] }
  0x19   : > { %747 = vmatpush3.msra.mxu0 %v242_v6  ;;  %836 = vmatpush3.msra.mxu1 %v242_v6  ;;  %v229_v41 = vld [vmem:[%s950_s26 + $0xe0] sm:$0xff]  ;;  %v230_v43 = vld [vmem:[%s950_s26 + $0xe8] sm:$0xff]  ;;  %v215_v44 = vld [vmem:[%s950_s26 + $0x70] sm:$0xff] }
  0x1a   : > { %748 = vmatprep.subr.mxu0 %v241_v7  ;;  %821 = vmatprep.subr.mxu1 %v241_v7  ;;  %v231_v45 = vld [vmem:[%s950_s26 + $0xf0] sm:$0xff]  ;;  %v216_v46 = vld [vmem:[%s950_s26 + $0x78] sm:$0xff]  ;;  %v990_v48 = vld [vmem:[%s1137_s2] ss:$0 sm:$0xff] }
  0x1b   : > { %749 = vmatpush3.msra.mxu0 %v241_v7  ;;  %837 = vmatpush3.msra.mxu1 %v241_v7  ;;  %v232_v47 = vld [vmem:[%s950_s26 + $0xf8] sm:$0xff]  ;;  %v995_v50 = vld [vmem:[%s1138_s3] ss:$0 sm:$0xff] }
  0x1c   : > { %750 = vmatprep.subr.mxu0 %v240_v8  ;;  %822 = vmatprep.subr.mxu1 %v240_v8 }
  0x1d   : > { %751 = vmatpush3.msra.mxu0 %v240_v8  ;;  %838 = vmatpush3.msra.mxu1 %v240_v8 }
  0x1e   : > { %752 = vmatprep.subr.mxu0 %v239_v9  ;;  %823 = vmatprep.subr.mxu1 %v239_v9 }
  0x1f   : > { %753 = vmatpush3.msra.mxu0 %v239_v9  ;;  %839 = vmatpush3.msra.mxu1 %v239_v9 }
  0x20   : > { %754 = vmatprep.subr.mxu0 %v238_v10  ;;  %824 = vmatprep.subr.mxu1 %v238_v10 }
  0x21   : > { %755 = vmatpush3.msra.mxu0 %v238_v10  ;;  %840 = vmatpush3.msra.mxu1 %v238_v10 }
  0x22   : > { %756 = vmatprep.subr.mxu0 %v237_v11  ;;  %825 = vmatprep.subr.mxu1 %v237_v11 }
  0x23   : > { %757 = vmatpush3.msra.mxu0 %v237_v11  ;;  %841 = vmatpush3.msra.mxu1 %v237_v11 }
  0x24   : > { %758 = vmatprep.subr.mxu0 %v236_v12  ;;  %826 = vmatprep.subr.mxu1 %v236_v12 }
  0x25   : > { %759 = vmatpush3.msra.mxu0 %v236_v12  ;;  %842 = vmatpush3.msra.mxu1 %v236_v12 }
  0x26   : > { %760 = vmatprep.subr.mxu0 %v235_v13  ;;  %827 = vmatprep.subr.mxu1 %v235_v13 }
  0x27   : > { %761 = vmatpush3.msra.mxu0 %v235_v13  ;;  %843 = vmatpush3.msra.mxu1 %v235_v13 }
  0x28   : > { %762 = vmatprep.subr.mxu0 %v234_v14  ;;  %828 = vmatprep.subr.mxu1 %v234_v14 }
  0x29   : > { %763 = vmatpush3.msra.mxu0 %v234_v14  ;;  %844 = vmatpush3.msra.mxu1 %v234_v14 }
  0x2a   : > { %764 = vmatprep.subr.mxu0 %v233_v15  ;;  %829 = vmatprep.subr.mxu1 %v233_v15 }
  0x2b   : > { %765 = vmatpush3.msra.mxu0 %v233_v15  ;;  %845 = vmatpush3.msra.mxu1 %v233_v15 }
  0x2c   : > { %766 = vmatprep.mubr.f32.mxu0 %v201_v16  ;;  %790 = vmatprep.mubr.f32.mxu1 %v217_v17 }
  0x2d   : > { %767 = vmatmul.mubr.f32.vlgmr.msra.gmra.mxu0 %v202_v18  ;;  %791 = vmatmul.mubr.f32.vlgmr.msra.gmra.mxu1 %v218_v19 }
  0x2e   : > { %769 = vmatprep.mubr.f32.mxu0 %v203_v20  ;;  %793 = vmatprep.mubr.f32.mxu1 %v219_v21 }
  0x31   : > { %770 = vmatmul.mubr.f32.gmra.mxu0 %v204_v22  ;;  %794 = vmatmul.mubr.f32.gmra.mxu1 %v220_v23 }
  0x32   : > { %772 = vmatprep.mubr.f32.mxu0 %v205_v24  ;;  %796 = vmatprep.mubr.f32.mxu1 %v221_v25 }
  0x35   : > { %773 = vmatmul.mubr.f32.gmra.mxu0 %v206_v26  ;;  %797 = vmatmul.mubr.f32.gmra.mxu1 %v222_v27 }
  0x36   : > { %775 = vmatprep.mubr.f32.mxu0 %v207_v28  ;;  %799 = vmatprep.mubr.f32.mxu1 %v223_v29 }
  0x39   : > { %776 = vmatmul.mubr.f32.gmra.mxu0 %v208_v30  ;;  %800 = vmatmul.mubr.f32.gmra.mxu1 %v224_v31 }
  0x3a   : > { %778 = vmatprep.mubr.f32.mxu0 %v209_v32  ;;  %802 = vmatprep.mubr.f32.mxu1 %v225_v33 }
  0x3d   : > { %779 = vmatmul.mubr.f32.gmra.mxu0 %v210_v34  ;;  %803 = vmatmul.mubr.f32.gmra.mxu1 %v226_v35 }
  0x3e   : > { %781 = vmatprep.mubr.f32.mxu0 %v211_v36  ;;  %805 = vmatprep.mubr.f32.mxu1 %v227_v37 }
  0x41   : > { %782 = vmatmul.mubr.f32.gmra.mxu0 %v212_v38  ;;  %806 = vmatmul.mubr.f32.gmra.mxu1 %v228_v39 }
  0x42   : > { %784 = vmatprep.mubr.f32.mxu0 %v213_v40  ;;  %808 = vmatprep.mubr.f32.mxu1 %v229_v41 }
  0x45   : > { %785 = vmatmul.mubr.f32.gmra.mxu0 %v214_v42  ;;  %809 = vmatmul.mubr.f32.gmra.mxu1 %v230_v43 }
  0x46   : > { %787 = vmatprep.mubr.f32.mxu0 %v215_v44  ;;  %811 = vmatprep.mubr.f32.mxu1 %v231_v45 }
  0x49   : > { %788 = vmatmul.mubr.f32.gmra.mxu0 %v216_v46  ;;  %812 = vmatmul.mubr.f32.gmra.mxu1 %v232_v47 }
  0xed   : > { %v768_v49 = vpop.f32.mrf.mxu0  ;;  %v792_v51 = vpop.f32.mrf.mxu1 }
  0xee   : > { %v482_v52 = vmul.f32 %v768_v49, %v990_v48  ;;  %v498_v53 = vmul.f32 %v792_v51, %v990_v48 }
  0xef   : > { %v315_v54 = vpop.f32.mrf.mxu0  ;;  %v395_v55 = vpop.f32.mrf.mxu1 }
  0xf0   : > { %v521_v56 = vadd.f32 %v995_v50, %v482_v52  ;;  %v537_v57 = vadd.f32 %v995_v50, %v498_v53  ;;  %v481_v58 = vmul.f32 %v990_v48, %v315_v54  ;;  %v497_v59 = vmul.f32 %v990_v48, %v395_v55 }
  0xf1   : > { %v771_v60 = vpop.f32.mrf.mxu0  ;;  %v795_v61 = vpop.f32.mrf.mxu1 }
  0xf2   : > { %v553_v62 = vmax.f32 %v521_v56, 0.0  ;;  %v569_v63 = vmax.f32 %v537_v57, 0.0  ;;  %v520_v0 = vadd.f32 %v995_v50, %v481_v58  ;;  %v536_v1 = vadd.f32 %v995_v50, %v497_v59 }
  0xf3   : > { %v484_v2 = vmul.f32 %v771_v60, %v990_v48  ;;  %v500_v3 = vmul.f32 %v795_v61, %v990_v48  ;;  %v325_v4 = vpop.f32.mrf.mxu0  ;;  %v405_v5 = vpop.f32.mrf.mxu1 }
  0xf4   : > { %586 = vst.msk [vmem:[%s1008_s10 + $0x8] sm:$0xff] %vm584_vm0, %v553_v62  ;;  %602 = vst.msk [vmem:[%s1008_s10 + $0x88] sm:$0xff] %vm584_vm0, %v569_v63  ;;  %v552_v6 = vmax.f32 %v520_v0, 0.0  ;;  %v568_v7 = vmax.f32 %v536_v1, 0.0  ;;  %v483_v8 = vmul.f32 %v990_v48, %v325_v4  ;;  %v499_v9 = vmul.f32 %v990_v48, %v405_v5 }
  0xf5   : > { %v523_v10 = vadd.f32 %v995_v50, %v484_v2  ;;  %v539_v11 = vadd.f32 %v995_v50, %v500_v3  ;;  %v774_v12 = vpop.f32.mrf.mxu0  ;;  %v798_v13 = vpop.f32.mrf.mxu1 }
  0xf6   : > { %585 = vst.msk [vmem:[%s1008_s10] sm:$0xff] %vm584_vm0, %v552_v6  ;;  %601 = vst.msk [vmem:[%s1008_s10 + $0x80] sm:$0xff] %vm584_vm0, %v568_v7  ;;  %v522_v14 = vadd.f32 %v995_v50, %v483_v8  ;;  %v538_v15 = vadd.f32 %v995_v50, %v499_v9  ;;  %v486_v16 = vmul.f32 %v774_v12, %v990_v48 }
  0xf7   : > { %v502_v17 = vmul.f32 %v798_v13, %v990_v48  ;;  %v555_v18 = vmax.f32 %v523_v10, 0.0  ;;  %v571_v19 = vmax.f32 %v539_v11, 0.0  ;;  %v335_v20 = vpop.f32.mrf.mxu0  ;;  %v415_v21 = vpop.f32.mrf.mxu1 }
  0xf8   : > { %v554_v22 = vmax.f32 %v522_v14, 0.0  ;;  %v570_v23 = vmax.f32 %v538_v15, 0.0  ;;  %v525_v24 = vadd.f32 %v995_v50, %v486_v16  ;;  %v485_v26 = vmul.f32 %v990_v48, %v335_v20 }
  0xf9   : > { %v541_v25 = vadd.f32 %v995_v50, %v502_v17  ;;  %588 = vst.msk [vmem:[%s1008_s10 + $0x18] sm:$0xff] %vm584_vm0, %v555_v18  ;;  %604 = vst.msk [vmem:[%s1008_s10 + $0x98] sm:$0xff] %vm584_vm0, %v571_v19  ;;  %v501_v27 = vmul.f32 %v990_v48, %v415_v21  ;;  %v777_v28 = vpop.f32.mrf.mxu0  ;;  %v801_v29 = vpop.f32.mrf.mxu1 }
  0xfa   : > { %587 = vst.msk [vmem:[%s1008_s10 + $0x10] sm:$0xff] %vm584_vm0, %v554_v22  ;;  %603 = vst.msk [vmem:[%s1008_s10 + $0x90] sm:$0xff] %vm584_vm0, %v570_v23  ;;  %v557_v30 = vmax.f32 %v525_v24, 0.0  ;;  %v488_v32 = vmul.f32 %v777_v28, %v990_v48  ;;  %v504_v33 = vmul.f32 %v801_v29, %v990_v48  ;;  %v524_v34 = vadd.f32 %v995_v50, %v485_v26 }
  0xfb   : > { %v573_v31 = vmax.f32 %v541_v25, 0.0  ;;  %v540_v35 = vadd.f32 %v995_v50, %v501_v27  ;;  %v345_v36 = vpop.f32.mrf.mxu0  ;;  %v425_v37 = vpop.f32.mrf.mxu1 }
  0xfc   : > { %590 = vst.msk [vmem:[%s1008_s10 + $0x28] sm:$0xff] %vm584_vm0, %v557_v30  ;;  %v527_v38 = vadd.f32 %v995_v50, %v488_v32  ;;  %v543_v39 = vadd.f32 %v995_v50, %v504_v33  ;;  %v487_v40 = vmul.f32 %v990_v48, %v345_v36  ;;  %v503_v41 = vmul.f32 %v990_v48, %v425_v37 }
  0xfd   : > { %606 = vst.msk [vmem:[%s1008_s10 + $0xa8] sm:$0xff] %vm584_vm0, %v573_v31  ;;  %v556_v42 = vmax.f32 %v524_v34, 0.0  ;;  %v572_v43 = vmax.f32 %v540_v35, 0.0  ;;  %v780_v44 = vpop.f32.mrf.mxu0  ;;  %v804_v45 = vpop.f32.mrf.mxu1 }
  0xfe   : > { %v559_v46 = vmax.f32 %v527_v38, 0.0  ;;  %v575_v47 = vmax.f32 %v543_v39, 0.0  ;;  %v526_v49 = vadd.f32 %v995_v50, %v487_v40  ;;  %v542_v51 = vadd.f32 %v995_v50, %v503_v41 }
  0xff   : > { %589 = vst.msk [vmem:[%s1008_s10 + $0x20] sm:$0xff] %vm584_vm0, %v556_v42  ;;  %605 = vst.msk [vmem:[%s1008_s10 + $0xa0] sm:$0xff] %vm584_vm0, %v572_v43  ;;  %v490_v52 = vmul.f32 %v780_v44, %v990_v48  ;;  %v506_v53 = vmul.f32 %v804_v45, %v990_v48  ;;  %v355_v54 = vpop.f32.mrf.mxu0  ;;  %v435_v55 = vpop.f32.mrf.mxu1 }
 0x100   : > { %592 = vst.msk [vmem:[%s1008_s10 + $0x38] sm:$0xff] %vm584_vm0, %v559_v46  ;;  %608 = vst.msk [vmem:[%s1008_s10 + $0xb8] sm:$0xff] %vm584_vm0, %v575_v47  ;;  %v558_v56 = vmax.f32 %v526_v49, 0.0  ;;  %v574_v57 = vmax.f32 %v542_v51, 0.0  ;;  %v489_v58 = vmul.f32 %v990_v48, %v355_v54  ;;  %v505_v59 = vmul.f32 %v990_v48, %v435_v55 }
 0x101   : > { %v529_v60 = vadd.f32 %v995_v50, %v490_v52  ;;  %v545_v61 = vadd.f32 %v995_v50, %v506_v53  ;;  %v783_v62 = vpop.f32.mrf.mxu0  ;;  %v807_v63 = vpop.f32.mrf.mxu1 }
 0x102   : > { %591 = vst.msk [vmem:[%s1008_s10 + $0x30] sm:$0xff] %vm584_vm0, %v558_v56  ;;  %607 = vst.msk [vmem:[%s1008_s10 + $0xb0] sm:$0xff] %vm584_vm0, %v574_v57  ;;  %v528_v0 = vadd.f32 %v995_v50, %v489_v58  ;;  %v544_v1 = vadd.f32 %v995_v50, %v505_v59  ;;  %v492_v2 = vmul.f32 %v783_v62, %v990_v48 }
 0x103   : > { %v508_v3 = vmul.f32 %v807_v63, %v990_v48  ;;  %v561_v4 = vmax.f32 %v529_v60, 0.0  ;;  %v577_v5 = vmax.f32 %v545_v61, 0.0  ;;  %v365_v6 = vpop.f32.mrf.mxu0  ;;  %v445_v7 = vpop.f32.mrf.mxu1 }
 0x104   : > { %v560_v8 = vmax.f32 %v528_v0, 0.0  ;;  %v576_v9 = vmax.f32 %v544_v1, 0.0  ;;  %v531_v10 = vadd.f32 %v995_v50, %v492_v2  ;;  %v491_v12 = vmul.f32 %v990_v48, %v365_v6 }
 0x105   : > { %v547_v11 = vadd.f32 %v995_v50, %v508_v3  ;;  %594 = vst.msk [vmem:[%s1008_s10 + $0x48] sm:$0xff] %vm584_vm0, %v561_v4  ;;  %610 = vst.msk [vmem:[%s1008_s10 + $0xc8] sm:$0xff] %vm584_vm0, %v577_v5  ;;  %v507_v13 = vmul.f32 %v990_v48, %v445_v7  ;;  %v786_v14 = vpop.f32.mrf.mxu0  ;;  %v810_v15 = vpop.f32.mrf.mxu1 }
 0x106   : > { %593 = vst.msk [vmem:[%s1008_s10 + $0x40] sm:$0xff] %vm584_vm0, %v560_v8  ;;  %609 = vst.msk [vmem:[%s1008_s10 + $0xc0] sm:$0xff] %vm584_vm0, %v576_v9  ;;  %v563_v16 = vmax.f32 %v531_v10, 0.0  ;;  %v494_v18 = vmul.f32 %v786_v14, %v990_v48  ;;  %v510_v19 = vmul.f32 %v810_v15, %v990_v48  ;;  %v530_v20 = vadd.f32 %v995_v50, %v491_v12 }
 0x107   : > { %v579_v17 = vmax.f32 %v547_v11, 0.0  ;;  %v546_v21 = vadd.f32 %v995_v50, %v507_v13  ;;  %v375_v22 = vpop.f32.mrf.mxu0  ;;  %v455_v23 = vpop.f32.mrf.mxu1 }
 0x108   : > { %596 = vst.msk [vmem:[%s1008_s10 + $0x58] sm:$0xff] %vm584_vm0, %v563_v16  ;;  %v533_v24 = vadd.f32 %v995_v50, %v494_v18  ;;  %v549_v25 = vadd.f32 %v995_v50, %v510_v19  ;;  %v493_v26 = vmul.f32 %v990_v48, %v375_v22  ;;  %v509_v27 = vmul.f32 %v990_v48, %v455_v23 }
 0x109   : > { %612 = vst.msk [vmem:[%s1008_s10 + $0xd8] sm:$0xff] %vm584_vm0, %v579_v17  ;;  %v562_v28 = vmax.f32 %v530_v20, 0.0  ;;  %v578_v29 = vmax.f32 %v546_v21, 0.0  ;;  %v789_v30 = vpop.f32.mrf.mxu0  ;;  %v813_v31 = vpop.f32.mrf.mxu1 }
 0x10a   : > { %v565_v32 = vmax.f32 %v533_v24, 0.0  ;;  %v581_v33 = vmax.f32 %v549_v25, 0.0  ;;  %v532_v34 = vadd.f32 %v995_v50, %v493_v26  ;;  %v548_v35 = vadd.f32 %v995_v50, %v509_v27 }
 0x10b   : > { %595 = vst.msk [vmem:[%s1008_s10 + $0x50] sm:$0xff] %vm584_vm0, %v562_v28  ;;  %611 = vst.msk [vmem:[%s1008_s10 + $0xd0] sm:$0xff] %vm584_vm0, %v578_v29  ;;  %v496_v36 = vmul.f32 %v789_v30, %v990_v48  ;;  %v512_v37 = vmul.f32 %v813_v31, %v990_v48  ;;  %v385_v38 = vpop.f32.mrf.mxu0  ;;  %v465_v39 = vpop.f32.mrf.mxu1 }
 0x10c   : > { %598 = vst.msk [vmem:[%s1008_s10 + $0x68] sm:$0xff] %vm584_vm0, %v565_v32  ;;  %614 = vst.msk [vmem:[%s1008_s10 + $0xe8] sm:$0xff] %vm584_vm0, %v581_v33  ;;  %v564_v40 = vmax.f32 %v532_v34, 0.0  ;;  %v580_v41 = vmax.f32 %v548_v35, 0.0  ;;  %v495_v42 = vmul.f32 %v990_v48, %v385_v38  ;;  %v511_v43 = vmul.f32 %v990_v48, %v465_v39 }
 0x10d   : > { %v535_v44 = vadd.f32 %v995_v50, %v496_v36  ;;  %v551_v45 = vadd.f32 %v995_v50, %v512_v37 }
 0x10e   : > { %597 = vst.msk [vmem:[%s1008_s10 + $0x60] sm:$0xff] %vm584_vm0, %v564_v40  ;;  %613 = vst.msk [vmem:[%s1008_s10 + $0xe0] sm:$0xff] %vm584_vm0, %v580_v41  ;;  %v534_v46 = vadd.f32 %v995_v50, %v495_v42  ;;  %v550_v47 = vadd.f32 %v995_v50, %v511_v43 }
 0x10f   : > { %v567_v49 = vmax.f32 %v535_v44, 0.0  ;;  %v583_v51 = vmax.f32 %v551_v45, 0.0 }
 0x110   : > { %v566_v52 = vmax.f32 %v534_v46, 0.0  ;;  %v582_v53 = vmax.f32 %v550_v47, 0.0 }
 0x111   : > { %600 = vst.msk [vmem:[%s1008_s10 + $0x78] sm:$0xff] %vm584_vm0, %v567_v49  ;;  %616 = vst.msk [vmem:[%s1008_s10 + $0xf8] sm:$0xff] %vm584_vm0, %v583_v51 }
 0x112   : > { %599 = vst.msk [vmem:[%s1008_s10 + $0x70] sm:$0xff] %vm584_vm0, %v566_v52  ;;  %615 = vst.msk [vmem:[%s1008_s10 + $0xf0] sm:$0xff] %vm584_vm0, %v582_v53 }
 0x113 PF: > { %s14_s15 = sadd.s32 1, %s860_s15  }
 0x114   : > { %p11_p4 = scmp.ge.s32.totalorder %s14_s15, 4  }
 0x116   :  { %13 = sbr.rel (!%p11_p4) target bundleno = 1 (0x1), region = 66 }

</bundles_post_ra>
